<compile_context>
chip_gen: v5e
topology: v5e:2x2
jax: 0.10.0
libtpu: 0.0.40
codegen_flags: <defaults>
</compile_context>

<pallas_src>
import functools

import jax
import jax.numpy as jnp
from jax.experimental import pallas as pl
from jax.experimental.pallas import tpu as pltpu


def _fold_to_128(v):
    """Sum a (1, W) f32 value down to (1, 128) per-lane partials.

    W is a power-of-two multiple of 128 (guaranteed by tile sizing). Pairwise
    halving: log2(W/128) lane-aligned vector adds — pure VPU, no cross-lane
    XLU work, and only O(log W) IR statements even for multi-MiB tiles.
    """
    w = v.shape[1]
    while w > 128:
        h = w // 2
        v = v[:, :h] + v[:, h:w]
        w = h
    return v


def _soft_ce_kernel(x_ref, t_ref, *out_refs,
                    ignore_index: int, hw: int, tile_px: int,
                    tiles_per_super: int, with_smooth: bool):
    """One grid step: a (C, TILE_PX) pixels-on-lanes tile of one batch element.

    x_ref  : (1, C, TILE_PX) logits tile (native dtype; cast to f32 in-kernel)
    t_ref  : (1, 1, TILE_PX) target tile (native integer dtype)
    out[0] : (1, 1, 128) f32 resident accumulator of -log p[target] partials
    out[1] : (1, 1, 128) f32 resident accumulator of -sum_c log p[c] partials
             (only present when with_smooth)
    """
    nll_ref = out_refs[0]
    s = pl.program_id(1)
    p = pl.program_id(2)

    @pl.when(p == 0)
    def _init():
        for r in out_refs:
            r[...] = jnp.zeros_like(r)

    x = x_ref[0].astype(jnp.float32)          # (C, TILE_PX)
    t = t_ref[0].astype(jnp.int32)            # (1, TILE_PX), widened in-register
    c = x.shape[0]

    # log-sum-exp over the class (sublane) axis; log_softmax never materialized.
    m = jnp.max(x, axis=0, keepdims=True)                               # (1, TILE_PX)
    lse = jnp.log(jnp.sum(jnp.exp(x - m), axis=0, keepdims=True)) + m   # (1, TILE_PX)

    # x at the target class via one-hot select (no TPU gather).
    class_ids = jax.lax.broadcasted_iota(jnp.int32, x.shape, 0)         # (C, TILE_PX)
    x_t = jnp.sum(jnp.where(class_ids == t, x, 0.0), axis=0, keepdims=True)

    # Mask ignore_index pixels and any ragged / overhanging tail. Per-lane, so
    # garbage loaded into OOB lanes never contaminates other pixels.
    tile_idx = s * tiles_per_super + p
    px = jax.lax.broadcasted_iota(jnp.int32, t.shape, 1) + tile_idx * tile_px
    valid = (t != ignore_index) & (px < hw)

    nll = jnp.where(valid, lse - x_t, 0.0)                   # -log p[target]
    nll_ref[0] = nll_ref[0] + _fold_to_128(nll)

    if with_smooth:
        sm_ref = out_refs[1]
        sum_x = jnp.sum(x, axis=0, keepdims=True)
        smooth = jnp.where(valid, c * lse - sum_x, 0.0)      # -sum_c log p[c]
        sm_ref[0] = sm_ref[0] + _fold_to_128(smooth)


def soft_cross_entropy_loss(logits_nchw, target_nhw, *,
                            smooth_factor: float = 0.0,
                            ignore_index: int = 1,
                            pipeline_vmem_budget_bytes: int = 16 * 1024 * 1024):
    """logits_nchw: (B, C, H, W); target_nhw: (B, H, W) integer. Returns scalar loss.

    Mean divides by the TOTAL pixel count (ignored pixels stay in the
    denominator) — pytorch_toolbelt semantics, not torch-CE 'mean'.
    """
    B, C, H, W = logits_nchw.shape
    hw = H * W
    n_pix = B * hw

    # Free reshapes only — no transpose, no padding copies, no target widening.
    x = logits_nchw.reshape(B, C, hw)
    t = target_nhw.reshape(B, 1, hw)

    # ---- Tile sizing with real VMEM accounting -----------------------------
    # Logits block (1, C, TILE_PX): C pads to its sublane tile (8 f32 / 16 bf16
    # / 32 int8). Target block (1, 1, TILE_PX): 1 sublane pads to its dtype's
    # sublane tile -> 32 B per pixel lane for any int width. Both are
    # double-buffered by the pipeline. The (1,1,128) output accumulators are
    # ~4 KiB each and ignored.
    bpe_x = jnp.dtype(x.dtype).itemsize
    sub_x = 32 // bpe_x
    c_pad = ((C + sub_x - 1) // sub_x) * sub_x
    per_px_bytes = 2 * c_pad * bpe_x + 2 * 32
    max_px = max(128, (pipeline_vmem_budget_bytes // per_px_bytes) // 128 * 128)

    hw_pad = ((hw + 127) // 128) * 128
    tile_px = 128
    while tile_px < hw_pad and tile_px * 2 <= max_px:
        tile_px *= 2                           # power-of-two multiple of 128

    n_px_tiles = pl.cdiv(hw, tile_px)
    # Second "parallel" axis over pixel super-tiles: lets both v7x TensorCores
    # work even when B == 1; costs nothing on single-TC v5e/v6e.
    ns = 2 if n_px_tiles >= 2 else 1
    np_per_super = pl.cdiv(n_px_tiles, ns)
    last_tile = n_px_tiles - 1

    with_smooth = float(smooth_factor) != 0.0

    kernel = functools.partial(
        _soft_ce_kernel, ignore_index=int(ignore_index), hw=hw,
        tile_px=tile_px, tiles_per_super=np_per_super, with_smooth=with_smooth)

    def in_map(b, s, p):
        # Clamp overhanging super-tiles to the last real tile; the kernel's
        # px < hw mask zeroes their contribution.
        return (b, 0, jnp.minimum(s * np_per_super + p, last_tile))

    def out_map(b, s, p):
        return (b * ns + s, 0, 0)

    out_shapes = [jax.ShapeDtypeStruct((B * ns, 1, 128), jnp.float32)]
    out_specs = [pl.BlockSpec((1, 1, 128), out_map)]
    if with_smooth:
        out_shapes.append(jax.ShapeDtypeStruct((B * ns, 1, 128), jnp.float32))
        out_specs.append(pl.BlockSpec((1, 1, 128), out_map))

    outs = pl.pallas_call(
        kernel,
        out_shape=tuple(out_shapes),
        grid_spec=pltpu.PrefetchScalarGridSpec(
            num_scalar_prefetch=0,
            grid=(B, ns, np_per_super),
            in_specs=[
                pl.BlockSpec((1, C, tile_px), in_map),
                pl.BlockSpec((1, 1, tile_px), in_map),
            ],
            out_specs=tuple(out_specs),
        ),
        compiler_params=pltpu.CompilerParams(
            dimension_semantics=("parallel", "parallel", "arbitrary"),
            vmem_limit_bytes=48 * 1024 * 1024),
    )(x, t)

    # Tiny wrapper-side reduction (B*ns*128 floats per stream) + scalar combine.
    eps = jnp.float32(smooth_factor)
    inv_n = jnp.float32(1.0) / jnp.float32(n_pix)  # mean over ALL pixels
    loss = (1.0 - eps) * jnp.sum(outs[0], dtype=jnp.float32) * inv_n
    if with_smooth:
        loss = loss + (eps / C) * jnp.sum(outs[1], dtype=jnp.float32) * inv_n
    return loss


def _reference(logits_nchw, target_nhw, smooth_factor, ignore_index):
    """Pure-JAX reference replicating the PyTorch code path."""
    logp = jax.nn.log_softmax(logits_nchw.astype(jnp.float32), axis=1)  # (B,C,H,W)
    tgt = target_nhw.astype(jnp.int32)
    pad_mask = (tgt == ignore_index)
    t_safe = jnp.where(pad_mask, 0, tgt)
    nll = -jnp.take_along_axis(logp, t_safe[:, None, :, :], axis=1)[:, 0]  # (B,H,W)
    smooth = -jnp.sum(logp, axis=1)                                        # (B,H,W)
    nll = jnp.where(pad_mask, 0.0, nll)
    smooth = jnp.where(pad_mask, 0.0, smooth)
    eps = smooth_factor
    c = logits_nchw.shape[1]
    return (1.0 - eps) * nll.mean() + (eps / c) * smooth.mean()


if __name__ == "__main__":
    key = jax.random.PRNGKey(0)
    k1, k2 = jax.random.split(key)

    B, C, H, W = 2, 4, 16, 16
    smooth_factor = 0.1
    ignore_index = 1  # the module's forward() hard-codes ignore_index=1

    logits = jax.random.normal(k1, (B, C, H, W), dtype=jnp.float32)
    target = jax.random.randint(k2, (B, H, W), 0, C, dtype=jnp.int32)

    # Smoothed path (both output streams).
    loss = soft_cross_entropy_loss(
        logits, target, smooth_factor=smooth_factor, ignore_index=ignore_index)
    loss = jax.block_until_ready(loss)
    ref = _reference(logits, target, smooth_factor, ignore_index)
    assert jnp.allclose(loss, ref, atol=1e-5, rtol=1e-5), (loss, ref)

    # eps == 0 specialization (single output stream).
    loss0 = soft_cross_entropy_loss(
        logits, target, smooth_factor=0.0, ignore_index=ignore_index)
    loss0 = jax.block_until_ready(loss0)
    ref0 = _reference(logits, target, 0.0, ignore_index)
    assert jnp.allclose(loss0, ref0, atol=1e-5, rtol=1e-5), (loss0, ref0)

    print("KERNEL_OK")
</pallas_src>

<mosaic_0001>
module attributes {stable_mosaic.version = 11 : i64} {
  func.func @_soft_ce_kernel(%arg0: i32, %arg1: i32, %arg2: i32, %arg3: memref<1x4x256xf32, #tpu.memory_space<vmem>>, %arg4: memref<1x1x256xi32, #tpu.memory_space<vmem>>, %arg5: memref<1x1x128xf32, #tpu.memory_space<vmem>>, %arg6: memref<1x1x128xf32, #tpu.memory_space<vmem>>) attributes {dimension_semantics = [#tpu.dimension_semantics<parallel>, #tpu.dimension_semantics<parallel>, #tpu.dimension_semantics<arbitrary>], iteration_bounds = array<i64: 2, 1, 1>, scalar_prefetch = 0 : i64, scratch_operands = 0 : i64, tpu.core_type = #tpu.core_type<tc>, window_params = [{transform_indices = @transform_0, window_bounds = array<i64: 1, 4, 256>}, {transform_indices = @transform_1, window_bounds = array<i64: 1, 1, 256>}, {transform_indices = @transform_2, window_bounds = array<i64: 1, 1, 128>}, {transform_indices = @transform_3, window_bounds = array<i64: 1, 1, 128>}]} {
    %c0_i32 = arith.constant 0 : i32
    %0 = arith.cmpi eq, %arg2, %c0_i32 : i32
    %1 = arith.extui %0 : i1 to i32
    %c0_i32_0 = arith.constant 0 : i32
    %2 = arith.cmpi ne, %1, %c0_i32_0 : i32
    scf.if %2 {
      %cst_27 = arith.constant 0.000000e+00 : f32
      %62 = vector.broadcast %cst_27 : f32 to vector<1x1x128xf32>
      %c0_28 = arith.constant 0 : index
      %c0_29 = arith.constant 0 : index
      %c0_30 = arith.constant 0 : index
      %63 = vector.load %arg5[%c0_28, %c0_29, %c0_30] : memref<1x1x128xf32, #tpu.memory_space<vmem>>, vector<1x1x128xf32>
      tpu.vector_store %arg5[%c0_28, %c0_29, %c0_30], %62 {strides = array<i32>} : memref<1x1x128xf32, #tpu.memory_space<vmem>>, vector<1x1x128xf32>,
      %cst_31 = arith.constant 0.000000e+00 : f32
      %64 = vector.broadcast %cst_31 : f32 to vector<1x1x128xf32>
      %c0_32 = arith.constant 0 : index
      %c0_33 = arith.constant 0 : index
      %c0_34 = arith.constant 0 : index
      %65 = vector.load %arg6[%c0_32, %c0_33, %c0_34] : memref<1x1x128xf32, #tpu.memory_space<vmem>>, vector<1x1x128xf32>
      tpu.vector_store %arg6[%c0_32, %c0_33, %c0_34], %64 {strides = array<i32>} : memref<1x1x128xf32, #tpu.memory_space<vmem>>, vector<1x1x128xf32>,
    } else {
    }
    %c0 = arith.constant 0 : index
    %c0_1 = arith.constant 0 : index
    %c0_2 = arith.constant 0 : index
    %3 = vector.load %arg3[%c0, %c0_1, %c0_2] : memref<1x4x256xf32, #tpu.memory_space<vmem>>, vector<1x4x256xf32>
    %4 = vector.shape_cast %3 : vector<1x4x256xf32> to vector<4x256xf32>
    %c0_3 = arith.constant 0 : index
    %c0_4 = arith.constant 0 : index
    %c0_5 = arith.constant 0 : index
    %5 = vector.load %arg4[%c0_3, %c0_4, %c0_5] : memref<1x1x256xi32, #tpu.memory_space<vmem>>, vector<1x1x256xi32>
    %6 = vector.shape_cast %5 : vector<1x1x256xi32> to vector<1x256xi32>
    %cst = arith.constant dense<0xFF800000> : vector<256xf32>
    %7 = vector.multi_reduction <maximumf>, %4, %cst [0] : vector<4x256xf32> to vector<256xf32>
    %8 = vector.shape_cast %7 : vector<256xf32> to vector<1x256xf32>
    %9 = vector.broadcast %8 : vector<1x256xf32> to vector<4x256xf32>
    %10 = arith.subf %4, %9 : vector<4x256xf32>
    %11 = math.exp %10 : vector<4x256xf32>
    %cst_6 = arith.constant dense<0.000000e+00> : vector<256xf32>
    %12 = vector.multi_reduction <add>, %11, %cst_6 [0] : vector<4x256xf32> to vector<256xf32>
    %13 = vector.shape_cast %12 : vector<256xf32> to vector<1x256xf32>
    %14 = math.log %13 : vector<1x256xf32>
    %15 = arith.addf %14, %8 : vector<1x256xf32>
    %16 = tpu.iota {dimensions = array<i32: 0>} : vector<4x256xi32>
    %17 = vector.broadcast %6 : vector<1x256xi32> to vector<4x256xi32>
    %18 = arith.cmpi eq, %16, %17 : vector<4x256xi32>
    %cst_7 = arith.constant 0.000000e+00 : f32
    %19 = vector.broadcast %cst_7 : f32 to vector<4x256xf32>
    %20 = arith.select %18, %4, %19 : vector<4x256xi1>, vector<4x256xf32>
    %cst_8 = arith.constant dense<0.000000e+00> : vector<256xf32>
    %21 = vector.multi_reduction <add>, %20, %cst_8 [0] : vector<4x256xf32> to vector<256xf32>
    %22 = vector.shape_cast %21 : vector<256xf32> to vector<1x256xf32>
    %c1_i32 = arith.constant 1 : i32
    %23 = arith.muli %arg1, %c1_i32 : i32
    %24 = arith.addi %23, %arg2 : i32
    %25 = tpu.iota {dimensions = array<i32: 1>} : vector<1x256xi32>
    %c256_i32 = arith.constant 256 : i32
    %26 = arith.muli %24, %c256_i32 : i32
    %27 = vector.broadcast %26 : i32 to vector<1x256xi32>
    %28 = arith.addi %25, %27 : vector<1x256xi32>
    %c1_i32_9 = arith.constant 1 : i32
    %29 = vector.broadcast %c1_i32_9 : i32 to vector<1x256xi32>
    %30 = arith.cmpi ne, %6, %29 : vector<1x256xi32>
    %c256_i32_10 = arith.constant 256 : i32
    %31 = vector.broadcast %c256_i32_10 : i32 to vector<1x256xi32>
    %32 = arith.cmpi slt, %28, %31 : vector<1x256xi32>
    %33 = arith.andi %30, %32 : vector<1x256xi1>
    %34 = arith.subf %15, %22 : vector<1x256xf32>
    %cst_11 = arith.constant 0.000000e+00 : f32
    %35 = vector.broadcast %cst_11 : f32 to vector<1x256xf32>
    %36 = arith.select %33, %34, %35 : vector<1x256xi1>, vector<1x256xf32>
    %c0_12 = arith.constant 0 : index
    %c0_13 = arith.constant 0 : index
    %c0_14 = arith.constant 0 : index
    %37 = vector.load %arg5[%c0_12, %c0_13, %c0_14] : memref<1x1x128xf32, #tpu.memory_space<vmem>>, vector<1x1x128xf32>
    %38 = vector.shape_cast %37 : vector<1x1x128xf32> to vector<1x128xf32>
    %39 = vector.extract_strided_slice %36 {offsets = [0, 0], sizes = [1, 128], strides = [1, 1]} : vector<1x256xf32> to vector<1x128xf32>
    %40 = vector.extract_strided_slice %36 {offsets = [0, 128], sizes = [1, 128], strides = [1, 1]} : vector<1x256xf32> to vector<1x128xf32>
    %41 = arith.addf %39, %40 : vector<1x128xf32>
    %42 = arith.addf %38, %41 : vector<1x128xf32>
    %c0_15 = arith.constant 0 : index
    %c0_16 = arith.constant 0 : index
    %c0_17 = arith.constant 0 : index
    %43 = vector.load %arg5[%c0_15, %c0_16, %c0_17] : memref<1x1x128xf32, #tpu.memory_space<vmem>>, vector<1x1x128xf32>
    %44 = vector.shape_cast %43 : vector<1x1x128xf32> to vector<1x128xf32>
    %45 = vector.shape_cast %42 : vector<1x128xf32> to vector<1x1x128xf32>
    tpu.vector_store %arg5[%c0_15, %c0_16, %c0_17], %45 {strides = array<i32>} : memref<1x1x128xf32, #tpu.memory_space<vmem>>, vector<1x1x128xf32>,
    %cst_18 = arith.constant dense<0.000000e+00> : vector<256xf32>
    %46 = vector.multi_reduction <add>, %4, %cst_18 [0] : vector<4x256xf32> to vector<256xf32>
    %47 = vector.shape_cast %46 : vector<256xf32> to vector<1x256xf32>
    %cst_19 = arith.constant 4.000000e+00 : f32
    %48 = vector.broadcast %cst_19 : f32 to vector<1x256xf32>
    %49 = arith.mulf %48, %15 : vector<1x256xf32>
    %50 = arith.subf %49, %47 : vector<1x256xf32>
    %cst_20 = arith.constant 0.000000e+00 : f32
    %51 = vector.broadcast %cst_20 : f32 to vector<1x256xf32>
    %52 = arith.select %33, %50, %51 : vector<1x256xi1>, vector<1x256xf32>
    %c0_21 = arith.constant 0 : index
    %c0_22 = arith.constant 0 : index
    %c0_23 = arith.constant 0 : index
    %53 = vector.load %arg6[%c0_21, %c0_22, %c0_23] : memref<1x1x128xf32, #tpu.memory_space<vmem>>, vector<1x1x128xf32>
    %54 = vector.shape_cast %53 : vector<1x1x128xf32> to vector<1x128xf32>
    %55 = vector.extract_strided_slice %52 {offsets = [0, 0], sizes = [1, 128], strides = [1, 1]} : vector<1x256xf32> to vector<1x128xf32>
    %56 = vector.extract_strided_slice %52 {offsets = [0, 128], sizes = [1, 128], strides = [1, 1]} : vector<1x256xf32> to vector<1x128xf32>
    %57 = arith.addf %55, %56 : vector<1x128xf32>
    %58 = arith.addf %54, %57 : vector<1x128xf32>
    %c0_24 = arith.constant 0 : index
    %c0_25 = arith.constant 0 : index
    %c0_26 = arith.constant 0 : index
    %59 = vector.load %arg6[%c0_24, %c0_25, %c0_26] : memref<1x1x128xf32, #tpu.memory_space<vmem>>, vector<1x1x128xf32>
    %60 = vector.shape_cast %59 : vector<1x1x128xf32> to vector<1x128xf32>
    %61 = vector.shape_cast %58 : vector<1x128xf32> to vector<1x1x128xf32>
    tpu.vector_store %arg6[%c0_24, %c0_25, %c0_26], %61 {strides = array<i32>} : memref<1x1x128xf32, #tpu.memory_space<vmem>>, vector<1x1x128xf32>,
    return
  }
  func.func @transform_0(%arg0: i32, %arg1: i32, %arg2: i32) -> (i32, i32, i32) {
    %c1_i32 = arith.constant 1 : i32
    %0 = arith.muli %arg1, %c1_i32 : i32
    %1 = arith.addi %0, %arg2 : i32
    %c0_i32 = arith.constant 0 : i32
    %2 = arith.minsi %1, %c0_i32 : i32
    %c0_i32_0 = arith.constant 0 : i32
    %c0_i32_1 = arith.constant 0 : i32
    return %arg0, %c0_i32_0, %2 : i32, i32, i32
  }
  func.func @transform_1(%arg0: i32, %arg1: i32, %arg2: i32) -> (i32, i32, i32) {
    %c1_i32 = arith.constant 1 : i32
    %0 = arith.muli %arg1, %c1_i32 : i32
    %1 = arith.addi %0, %arg2 : i32
    %c0_i32 = arith.constant 0 : i32
    %2 = arith.minsi %1, %c0_i32 : i32
    %c0_i32_0 = arith.constant 0 : i32
    %c0_i32_1 = arith.constant 0 : i32
    return %arg0, %c0_i32_0, %2 : i32, i32, i32
  }
  func.func @transform_2(%arg0: i32, %arg1: i32, %arg2: i32) -> (i32, i32, i32) {
    %c1_i32 = arith.constant 1 : i32
    %0 = arith.muli %arg0, %c1_i32 : i32
    %1 = arith.addi %0, %arg1 : i32
    %c0_i32 = arith.constant 0 : i32
    %c0_i32_0 = arith.constant 0 : i32
    %c0_i32_1 = arith.constant 0 : i32
    return %1, %c0_i32, %c0_i32_0 : i32, i32, i32
  }
  func.func @transform_3(%arg0: i32, %arg1: i32, %arg2: i32) -> (i32, i32, i32) {
    %c1_i32 = arith.constant 1 : i32
    %0 = arith.muli %arg0, %c1_i32 : i32
    %1 = arith.addi %0, %arg1 : i32
    %c0_i32 = arith.constant 0 : i32
    %c0_i32_0 = arith.constant 0 : i32
    %c0_i32_1 = arith.constant 0 : i32
    return %1, %c0_i32, %c0_i32_0 : i32, i32, i32
  }
}

</mosaic_0001>

<bundles_post_ra>
// kernel: tpu_custom_call.1
= control target key start
LH: loop header
LB: loop body
LE: loop exit
PB: predicated region body
PF: predicated region fallthrough
CT: control target
= control target key end

     0   :  { %9 = vsyncpa [#allocation3], 0  ;;  %s1128_s0 = inlined_call_operand.hbm [shape: f32[2,4,256], index: 0, kind: input, shape index: {}]   ;;  %s1129_s1 = inlined_call_operand.hbm [shape: s32[2,1,256], index: 1, kind: input, shape index: {}]   ;;  %s1130_s2 = inlined_call_operand.hbm [shape: f32[2,1,128], index: 2, kind: output, shape index: {0}]   ;;  %s1131_s3 = inlined_call_operand.hbm [shape: f32[2,1,128], index: 3, kind: output, shape index: {1}]  }
   0x1   :  { %11 = vsyncpa [#allocation3 + $0x1], 0 }
   0x2   :  { %12 = vsyncpa [#allocation6], 0 }
   0x3   :  { %14 = vsyncpa [#allocation6 + $0x1], 0 }
   0x4   :  { %15 = vsyncpa [#allocation4], 0 }
   0x5   :  { %17 = vsyncpa [#allocation4 + $0x1], 0 }
   0x6   :  { %18 = vsyncpa [#allocation9], 0 }
   0x7   :  { %20 = vsyncpa [#allocation9 + $0x1], 0  ;;  %s919_s12 = smov 0   ;;  %s921_s13 = smov 0  }
   0x8   :  { %s923_s14 = smov 0   ;;  %s925_s15 = smov 0  }
   0x9   :  { %s927_s16 = smov 0   ;;  %s929_s17 = smov 0  }
   0xa LB: > { %s622_s18 = sadd.s32 4294967295, %s895_s17   ;;  %s623_s19 = sadd.s32 4294967294, %s895_s17   ;;  %s895_s17 = sphi %s929_s17, %s26_s17   ;;  %s891_s16 = sphi %s927_s16, %s1143_s16   ;;  %s887_s15 = sphi %s925_s15, %s1142_s15   ;;  %s883_s14 = sphi %s923_s14, %s1141_s14   ;;  %s879_s13 = sphi %s921_s13, %s1140_s13   ;;  %s875_s12 = sphi %s919_s12, %s1139_s12  }
   0xb   : > { %s45_s20 = sadd.s32 1, %s891_s16  ;;  %s60_s21 = sadd.s32 1, %s883_s14 }
   0xc   : > { %p47_p0 = scmp.ge.s32.totalorder %s45_s20, 2  ;;  %p67_p1 = scmp.ne.s32.totalorder %s883_s14, %s879_s13 }
   0xd   : > { %p68_p2 = scmp.eq.s32.totalorder %s895_s17, 0  ;;  %p73_p3 = scmp.ne.s32.totalorder %s879_s13, %s875_s12 }
   0xe   : > { %s1145_s20 = smov (%p47_p0, %s45_s20), 0  ;;  %p74_p5 = scmp.eq.s32.totalorder %s622_s18, 0 }
   0xf   : > { %p960_p4 = por %p68_p2, %p67_p1  ;;  %s55_s23 = ssub.s32 %s891_s16, %s1145_s20 }
  0x10   : > { %p133_p6 = scmp.eq.s32.totalorder %s622_s18, 1  ;;  %p58_p7 = scmp.eq.s32.totalorder %s55_s23, 0 }
  0x11   : > { %p966_p8 = por %p74_p5, %p73_p3  ;;  %p139_p10 = scmp.eq.s32.totalorder %s623_s19, 1 }
  0x12   : > { %p970_p9 = por %p133_p6, %p67_p1  ;;  %p625_p12 = scmp.ge.s32.totalorder %s895_s17, 2 }
  0x13   : > { %s975_s26 = scalar_select %p58_p7, %s883_s14, %s60_s21  }
  0x14   : > { %p977_p11 = por %p139_p10, %p73_p3  ;;  %p659_p13 = scmp.lt.s32.totalorder %s895_s17, 2 }
  0x15   : > { %s187_s28 = sand.u32 1, %s883_s14   ;;  %s636_s30 = sshll.u32 %s891_s16, 3 }
  0x16   : > { %s626_s29 = sshll.u32 %s187_s28, 3  ;;  %s201_s6 = scalar_lea.hbm %s1128_s0, %s636_s30 }
  0x17   : > { %s191_s7 = scalar_lea.vmem [#allocation2], %s626_s29  ;;  %s203_s9 = sshll.u32 %s201_s6, 4  ;;  %s204_s9 = int_to_ptr.hbm [resolvable:$true] %s203_s9 }
  0x18   : > { %s205_s8 = sshll.u32 %s191_s7, 4  ;;  %p990_p0 = pnand %p659_p13, %p960_p4  ;;  %s206_s8 = int_to_ptr.vmem [resolvable:$true] %s205_s8 }
  0x19   : > { %p631_p1 = scmp.ge.s32.totalorder %s895_s17, 1  ;;  %p234_p2 = scmp.lt.s32.totalorder %s895_s17, 3 }
  0x1a   : > { %s188_s11 = scalar_lea.sflag [#allocation3], %s187_s28  ;;  %s629_s18 = sshll.u32 %s187_s28, 1 }
  0x1b   : > { %648 = dma.hbm_to_vmem [thread:$0]  (!%p990_p0), %s204_s9, 128, %s206_s8, %s188_s11  }
  0x1c   : > { %p235_p3 = pnand %p631_p1, %p234_p2  ;;  %s630_s19 = sshll.u32 %s891_s16, 1 }
  0x1d   : > { %s225_s29 = scalar_lea.hbm %s1129_s1, %s630_s19  ;;  %s216_s30 = scalar_lea.vmem [#allocation5], %s629_s18 }
  0x1e   : > { %s229_s22 = sshll.u32 %s216_s30, 4  ;;  %s227_s4 = sshll.u32 %s225_s29, 4  ;;  %s230_s22 = int_to_ptr.vmem [resolvable:$true] %s229_s22  ;;  %s228_s4 = int_to_ptr.hbm [resolvable:$true] %s227_s4 }
  0x1f   : > { %s213_s5 = scalar_lea.sflag [#allocation6], %s187_s28  ;;  %238 = sbr.rel (%p235_p3) target bundleno = 136 (0x88), region = 28 }
  0x20   : > { %651 = dma.hbm_to_vmem [thread:$0]  (!%p990_p0), %s228_s4, 32, %s230_s22, %s213_s5  }
  0x21   : > { %s1005_s6 = sand.u32 (!%p235_p3), 1, %s879_s13  }
  0x22   : > { %s632_s7 = sshll.u32 (!%p235_p3), %s1005_s6, 3  ;;  %s241_s8 = scalar_lea.sflag (!%p235_p3), [#allocation3], %s1005_s6 }
  0x23   : > { %s244_s9 = scalar_lea.vmem (!%p235_p3), [#allocation2], %s632_s7 }
  0x24   : > { %858 = dma.done.wait (%p966_p8), %s241_s8, 128  }
  0x25   : > { %860 = vsyncadd (%p966_p8), %s241_s8, 4294967168  ;;  %s633_s28 = sshll.u32 %s1005_s6, 1  ;;  %s251_s10 = scalar_lea.sflag [#allocation6], %s1005_s6 }
  0x26   : > { %s1015_s11 = scalar_lea.vmem [#allocation5], %s633_s28 }
  0x27   : > { %862 = dma.done.wait (%p966_p8), %s251_s10, 32  }
  0x28   : > { %864 = vsyncadd (%p966_p8), %s251_s10, 4294967264  ;;  %v302_v0 = vld [vmem:[%s244_s9] sm:$0xff]  ;;  %vm310_vm0 = vcmask 1043456   ;;  %s1031_s24 = scalar_lea.vmem [#allocation7], %s1005_s6  ;;  %v897_v21 = vmov 0.0   ;;  %s1035_s18 = scalar_lea.vmem [#allocation8], %s1005_s6  ;;  %v359_v23 = vlaneseq }
  0x29   : > { %305 = vst [vmem:[#allocation1] ss:$2 sm:$0xff] %v302_v0  ;;  %v1039_v24 = vld [vmem:[%s1015_s11] sm:$0x3]  ;;  %v898_v62 = vmov 1   ;;  %vm400_vm3 = vcmask 1040384   ;;  %s469_s23 = scalar_lea.hbm %s1130_s2, %s887_s15  ;;  %s483_s5 = scalar_lea.hbm %s1131_s3, %s887_s15 }
  0x2a   : > { %300 = vst [vmem:[%s1031_s24] sm:$0x1] %v897_v21  ;;  %v360_v29 = vshrl.u32 %v359_v23, 7  ;;  %v361_v32 = vperm.slane %v1039_v24, 0  ;;  %v362_v33 = vperm.slane %v1039_v24, 1  ;;  %v399_v63 = vrot.slane %v898_v62, 7  ;;  %s471_s29 = sshll.u32 %s1031_s24, 4  ;;  %s472_s29 = int_to_ptr.vmem [resolvable:$true] %s471_s29 }
  0x2b   : > { %301 = vst [vmem:[%s1035_s18] sm:$0x1] %v897_v21  ;;  %vm394_vm4 = vcmp.ne.s32.totalorder %v1039_v24, 1  ;;  %s1066_s30 = sshll.u32 %s469_s23, 4  ;;  %s485_s7 = sshll.u32 %s1035_s18, 4  ;;  %s474_s30 = int_to_ptr.hbm [resolvable:$true] %s1066_s30  ;;  %s486_s7 = int_to_ptr.vmem [resolvable:$true] %s485_s7 }
  0x2c   : > { %vm363_vm1 = vcmp.eq.s32.totalorder %v360_v29, %v361_v32  ;;  %vm364_vm2 = vcmp.eq.s32.totalorder %v360_v29, %v362_v33  ;;  %s1078_s8 = sshll.u32 %s483_s5, 4  ;;  %s456_s9 = scalar_lea.sflag [#allocation4], %s1005_s6  ;;  %s488_s8 = int_to_ptr.hbm [resolvable:$true] %s1078_s8 }
  0x2d   : > { %s791_s28 = sshra.s32 %s474_s30, 4  ;;  %s797_s19 = scalar_lea.hbm %s1130_s2, 2  ;;  %s792_s28 = int_to_ptr.hbm [resolvable:$true] %s791_s28 }
  0x2e   : > { %s793_s10 = scalar_lea.hbm %s792_s28, 1  ;;  %p798_p7 = scmp.lt.s32.totalorder %s792_s28, %s1130_s2 }
  0x2f   : > { %p794_p4 = scmp.ne.s32.totalorder %s792_s28, %s793_s10  ;;  %p799_p8 = scmp.lt.s32.totalorder %s797_s19, %s793_s10 }
  0x30   : > { %v306_v1 = vld.sshfl [vmem:[#allocation1] sm:$0xff pattern:$0x75316420]  ;;  %v307_v2 = vld.sshfl [vmem:[#allocation1 + $0x8] sm:$0xff pattern:$0x75316420] }
  0x31   : > { %v311_v3 = vsel %vm310_vm0, %v306_v1, -inf  ;;  %v318_v4 = vsel %vm310_vm0, %v307_v2, -inf  ;;  %p795_p5 = pnand %p794_p4, %p970_p9  ;;  %p800_p10 = por %p799_p8, %p798_p7 }
  0x32   : > { %v312_v5 = vrot.slane %v311_v3, 4  ;;  %v319_v6 = vrot.slane %v318_v4, 4 }
  0x33   : > { %p796_p6 = pneg %p795_p5 }
  0x34   : > { %v313_v7 = vmax.f32 %v311_v3, %v312_v5  ;;  %v320_v8 = vmax.f32 %v318_v4, %v319_v6 }
  0x35   : > { %p801_p13 = pnand %p800_p10, %p796_p6 }
  0x36   : > { %v314_v9 = vrot.slane %v313_v7, 2  ;;  %v321_v10 = vrot.slane %v320_v8, 2 }
  0x38   : > { %v315_v11 = vmax.f32 %v313_v7, %v314_v9  ;;  %v322_v12 = vmax.f32 %v320_v8, %v321_v10  ;;  %v401_v10 = vsel %vm400_vm3, 1, %v399_v63 }
  0x39   : > { %vm402_vm5 = vcmp.ne.s32.totalorder %v401_v10, 0 }
  0x3a   : > { %v316_v13 = vrot.slane %v315_v11, 1  ;;  %v323_v14 = vrot.slane %v322_v12, 1  ;;  %vm1053_vm6 = vmand %vm394_vm4, %vm402_vm5 }
  0x3c   : > { %v1023_v15 = vmax.f32 %v322_v12, %v323_v14  ;;  %v1025_v16 = vmax.f32 %v315_v11, %v316_v13 }
  0x3e   : > { %v327_v17 = vrot.slane %v1023_v15, 4 }
  0x40   : > { %v328_v18 = vsel %vm310_vm0, %v1025_v16, %v327_v17 }
  0x41   : > { %v330_v19 = vsub.f32 %v302_v0, %v328_v18 }
  0x43   : > { %v331_v20 = vmul.f32 1.442695, %v330_v19 }
  0x45   : > { %711 = vpow2.f32 %v331_v20 }
  0x4b   : > { %v712_v22 = vpop.eup %711 }
  0x4c   : > { %334 = vst [vmem:[#allocation1] ss:$2 sm:$0xff] %v712_v22 }
  0x53   : > { %v335_v25 = vld.sshfl [vmem:[#allocation1] sm:$0xff pattern:$0x75316420]  ;;  %v336_v26 = vld.sshfl [vmem:[#allocation1 + $0x8] sm:$0xff pattern:$0x75316420] }
  0x54   : > { %v339_v27 = vsel %vm310_vm0, %v335_v25, 0.0  ;;  %v346_v28 = vsel %vm310_vm0, %v336_v26, 0.0  ;;  %365 = vst [vmem:[#allocation1] ss:$2 sm:$0xff] %v302_v0 }
  0x55   : > { %v340_v30 = vrot.slane %v339_v27, 4  ;;  %v347_v31 = vrot.slane %v346_v28, 4 }
  0x57   : > { %v341_v34 = vadd.f32 %v340_v30, %v339_v27  ;;  %v348_v35 = vadd.f32 %v347_v31, %v346_v28 }
  0x59   : > { %v342_v36 = vrot.slane %v341_v34, 2  ;;  %v349_v37 = vrot.slane %v348_v35, 2 }
  0x5b   : > { %v343_v38 = vadd.f32 %v342_v36, %v341_v34  ;;  %v350_v39 = vadd.f32 %v349_v37, %v348_v35  ;;  %v366_v40 = vld.sshfl [vmem:[#allocation1] sm:$0xff pattern:$0x75316420]  ;;  %v367_v41 = vld.sshfl [vmem:[#allocation1 + $0x8] sm:$0xff pattern:$0x75316420] }
  0x5c   : > { %419 = vst [vmem:[#allocation1] ss:$2 sm:$0xff] %v302_v0  ;;  %v370_v42 = vsel %vm363_vm1, %v366_v40, 0.0  ;;  %v371_v43 = vsel %vm364_vm2, %v367_v41, 0.0  ;;  %v412_v35 = vld [vmem:[%s1031_s24] sm:$0x1] }
  0x5d   : > { %v344_v44 = vrot.slane %v343_v38, 1  ;;  %v351_v45 = vrot.slane %v350_v39, 1  ;;  %v372_v46 = vsel %vm310_vm0, %v370_v42, 0.0  ;;  %v379_v47 = vsel %vm310_vm0, %v371_v43, 0.0  ;;  %v448_v41 = vld [vmem:[%s1035_s18] sm:$0x1] }
  0x5e   : > { %v373_v48 = vrot.slane %v372_v46, 4  ;;  %v380_v49 = vrot.slane %v379_v47, 4 }
  0x5f   : > { %v345_v50 = vadd.f32 %v344_v44, %v343_v38  ;;  %v352_v51 = vadd.f32 %v351_v45, %v350_v39 }
  0x60   : > { %v374_v52 = vadd.f32 %v373_v48, %v372_v46  ;;  %v381_v53 = vadd.f32 %v380_v49, %v379_v47 }
  0x61   : > { %713 = vlog2.f32 %v345_v50 }
  0x62   : > { %715 = vlog2.f32 %v352_v51  ;;  %v375_v54 = vrot.slane %v374_v52, 2  ;;  %v382_v55 = vrot.slane %v381_v53, 2 }
  0x63   : > { %v420_v56 = vld.sshfl [vmem:[#allocation1] sm:$0xff pattern:$0x75316420]  ;;  %v421_v57 = vld.sshfl [vmem:[#allocation1 + $0x8] sm:$0xff pattern:$0x75316420] }
  0x64   : > { %v376_v58 = vadd.f32 %v375_v54, %v374_v52  ;;  %v383_v59 = vadd.f32 %v382_v55, %v381_v53  ;;  %v424_v60 = vsel %vm310_vm0, %v420_v56, 0.0  ;;  %v431_v61 = vsel %vm310_vm0, %v421_v57, 0.0 }
  0x65   : > { %v425_v0 = vrot.slane %v424_v60, 4  ;;  %v432_v1 = vrot.slane %v431_v61, 4 }
  0x66   : > { %v384_v3 = vrot.slane %v383_v59, 1  ;;  %v377_v8 = vrot.slane %v376_v58, 1 }
  0x67   : > { %v714_v2 = vpop.eup %713  ;;  %v426_v4 = vadd.f32 %v425_v0, %v424_v60  ;;  %v433_v5 = vadd.f32 %v432_v1, %v431_v61 }
  0x68   : > { %v716_v6 = vpop.eup %715  ;;  %v354_v7 = vmul.f32 0.6931472, %v714_v2  ;;  %v385_v17 = vadd.f32 %v384_v3, %v383_v59  ;;  %v378_v20 = vadd.f32 %v377_v8, %v376_v58 }
  0x69   : > { %v356_v9 = vmul.f32 0.6931472, %v716_v6  ;;  %v427_v11 = vrot.slane %v426_v4, 2  ;;  %v434_v12 = vrot.slane %v433_v5, 2 }
  0x6a   : > { %v357_v13 = vadd.f32 %v354_v7, %v1025_v16 }
  0x6b   : > { %v358_v14 = vadd.f32 %v356_v9, %v1023_v15  ;;  %v428_v18 = vadd.f32 %v427_v11, %v426_v4  ;;  %v435_v19 = vadd.f32 %v434_v12, %v433_v5 }
  0x6c   : > { %v404_v25 = vsub.f32 %v357_v13, %v378_v20  ;;  %v438_v30 = vmul.f32 4.0, %v357_v13 }
  0x6d   : > { %v405_v21 = vsub.f32 %v358_v14, %v385_v17  ;;  %v429_v22 = vrot.slane %v428_v18, 1  ;;  %v436_v23 = vrot.slane %v435_v19, 1  ;;  %v439_v28 = vmul.f32 4.0, %v358_v14 }
  0x6f   : > { %v408_v16 = vrot.slane %v405_v21, 7  ;;  %v430_v15 = vadd.f32 %v429_v22, %v428_v18  ;;  %v437_v27 = vadd.f32 %v436_v23, %v435_v19 }
  0x71   : > { %v409_v29 = vsel %vm400_vm3, %v404_v25, %v408_v16  ;;  %v441_v24 = vsub.f32 %v439_v28, %v437_v27  ;;  %v440_v33 = vsub.f32 %v438_v30, %v430_v15 }
  0x72   : > { %v411_v31 = vsel %vm1053_vm6, %v409_v29, 0.0 }
  0x73   : > { %v414_v32 = vrot.slane %v411_v31, 1  ;;  %v444_v34 = vrot.slane %v441_v24, 7 }
  0x75   : > { %v416_v36 = vadd.f32 %v414_v32, %v411_v31  ;;  %v445_v37 = vsel %vm400_vm3, %v440_v33, %v444_v34 }
  0x76   : > { %v447_v38 = vsel %vm1053_vm6, %v445_v37, 0.0 }
  0x77   : > { %v417_v39 = vadd.f32 %v416_v36, %v412_v35  ;;  %v450_v40 = vrot.slane %v447_v38, 1 }
  0x79   : > { %418 = vst [vmem:[%s1031_s24] sm:$0x1] %v417_v39  ;;  %v452_v42 = vadd.f32 %v450_v40, %v447_v38 }
  0x7a   : > { %804 = shalt.err (!%p801_p13)
}
  0x7b   : > { %641 = dma.vmem_to_hbm [thread:$0]  (%p970_p9), %s472_s29, 16, %s474_s30, %s456_s9   ;;  %v453_v43 = vadd.f32 %v452_v42, %v448_v41 }
  0x7c   : > { %s460_s24 = scalar_lea.sflag [#allocation9], %s1005_s6  ;;  %s819_s22 = sshra.s32 %s488_s8, 4  ;;  %s820_s22 = int_to_ptr.hbm [resolvable:$true] %s819_s22 }
  0x7d   : > { %454 = vst [vmem:[%s1035_s18] sm:$0x1] %v453_v43  ;;  %s821_s4 = scalar_lea.hbm %s820_s22, 1  ;;  %s825_s10 = scalar_lea.hbm %s1131_s3, 2 }
  0x7e   : > { %p822_p0 = scmp.ne.s32.totalorder %s820_s22, %s821_s4  ;;  %p826_p3 = scmp.lt.s32.totalorder %s820_s22, %s1131_s3 }
  0x7f   : > { %p827_p4 = scmp.lt.s32.totalorder %s825_s10, %s821_s4 }
  0x80   : > { %p823_p1 = pnand %p822_p0, %p970_p9 }
  0x81   : > { %p828_p5 = por %p827_p4, %p826_p3 }
  0x82   : > { %p824_p2 = pneg %p823_p1 }
  0x84   : > { %p829_p6 = pnand %p828_p5, %p824_p2 }
  0x86   : > { %832 = shalt.err (!%p829_p6)
}
  0x87   : > { %642 = dma.vmem_to_hbm [thread:$0]  (%p970_p9), %s486_s7, 16, %s488_s8, %s460_s24  }
  0x88 PF: > { %s499_s6 = sand.u32 1, %s875_s12   ;;  %p653_p7 = pnand %p625_p12, %p977_p11 }
  0x89   : > { %s500_s18 = scalar_lea.sflag [#allocation4], %s499_s6 }
  0x8a   : > { %p654_p8 = pneg %p653_p7 }
  0x8c   : > { %866 = dma.done.wait (%p654_p8), %s500_s18, 16  }
  0x8d   : > { %868 = vsyncadd (%p654_p8), %s500_s18, 4294967280  ;;  %s509_s29 = scalar_lea.sflag [#allocation9], %s499_s6 }
  0x8e   : > { %870 = dma.done.wait (%p654_p8), %s509_s29, 16  }
  0x8f   : > { %872 = vsyncadd (%p654_p8), %s509_s29, 4294967280  ;;  %s26_s17 = sadd.s32 1, %s895_s17   ;;  %s1139_s12 = smov %s879_s13 }
  0x90   : > { %p23_p10 = scmp.ge.s32.totalorder %s26_s17, 4   ;;  %s1140_s13 = smov %s883_s14 }
  0x91   : > { %s1141_s14 = smov %s975_s26  ;;  %s1142_s15 = smov %s891_s16 }
  0x92   : > { %s1143_s16 = smov %s1145_s20  ;;  %25 = sbr.rel (!%p23_p10) target bundleno = 10 (0xa), region = 107 }
  0x97   :  { %514 = vsyncpa [#allocation3], 1 }
  0x98   :  { %516 = vsyncpa [#allocation3 + $0x1], 1 }
  0x99   :  { %517 = vsyncpa [#allocation6], 1 }
  0x9a   :  { %519 = vsyncpa [#allocation6 + $0x1], 1 }
  0x9b   :  { %520 = vsyncpa [#allocation4], 1 }
  0x9c   :  { %522 = vsyncpa [#allocation4 + $0x1], 1 }
  0x9d   :  { %523 = vsyncpa [#allocation9], 1 }
  0x9e   :  { %525 = vsyncpa [#allocation9 + $0x1], 1 }

</bundles_post_ra>
